<compile_context>
chip_gen: v7x
topology: tpu7x:2x2x1
jax: 0.10.0
libtpu: 0.0.40
codegen_flags: <defaults>
</compile_context>

<pallas_src>
import functools
import math

import jax
import jax.numpy as jnp
from jax.experimental import pallas as pl
from jax.experimental.pallas import tpu as pltpu


def _round_up(a, b):
    return (a + b - 1) // b * b


def _vmem_capacity_bytes():
    """Physical VMEM per TensorCore; conservative v7x fallback if unknown."""
    try:
        return int(pltpu.get_tpu_info().vmem_capacity_bytes)
    except Exception:
        return 64 << 20


@functools.lru_cache(maxsize=None)
def _single_buffer_mode():
    """Trace/compile-time capability check for pipeline_mode=pl.Buffered(1).

    Runs once per process on a tiny copy kernel; never wraps the real kernel
    call, so real lowering/runtime errors are not swallowed.
    """
    if not hasattr(pl, "Buffered"):
        return None
    try:
        mode = pl.Buffered(1)

        def _copy(x_ref, o_ref):
            o_ref[...] = x_ref[...]

        probe = pl.pallas_call(
            _copy,
            out_shape=jax.ShapeDtypeStruct((8, 128), jnp.float32),
            grid=(1,),
            in_specs=[pl.BlockSpec((8, 128), lambda i: (0, 0),
                                   pipeline_mode=mode)],
            out_specs=pl.BlockSpec((8, 128), lambda i: (0, 0)),
        )
        jax.jit(probe).lower(
            jax.ShapeDtypeStruct((8, 128), jnp.float32)).compile()
        return mode
    except Exception:
        return None


def _make_kernel(with_lora, compute_dtype):
    f32 = jnp.float32

    if with_lora:
        def kernel(x_ref, wq_ref, wk_ref, wv_ref,
                   bqb_ref, bkb_ref, bvb_ref,
                   a_cat_ref, bqw_ref, bvw_ref, out_ref):
            # Cast the activation tile to the compute dtype in-kernel (VPU) —
            # avoids a separate wrapper-side HBM convert pass.
            x = x_ref[...].astype(compute_dtype)          # (tm, dim)
            dim = wq_ref.shape[1]
            r_pad = bqw_ref.shape[0]

            # Fused LoRA "A" projection (A_q | A_v in separate lane groups).
            xa = jnp.dot(x, a_cat_ref[...],
                         preferred_element_type=f32)      # (tm, 2*r_pad)
            xa_c = xa.astype(compute_dtype)
            # LoRA "B" matmuls in the compute dtype, f32 accumulation.
            new_q = jnp.dot(xa_c[:, :r_pad], bqw_ref[...],
                            preferred_element_type=f32)   # (tm, dim)
            new_v = jnp.dot(xa_c[:, r_pad:], bvw_ref[...],
                            preferred_element_type=f32)   # (tm, dim)

            # Base projection per output slice; bias + LoRA fused into sliced
            # stores — no (tm, 3*dim) live accumulator.
            q = jnp.dot(x, wq_ref[...], preferred_element_type=f32) \
                + bqb_ref[...] + new_q
            out_ref[:, :dim] = q.astype(out_ref.dtype)

            k = jnp.dot(x, wk_ref[...], preferred_element_type=f32) \
                + bkb_ref[...]
            out_ref[:, dim:2 * dim] = k.astype(out_ref.dtype)

            v = jnp.dot(x, wv_ref[...], preferred_element_type=f32) \
                + bvb_ref[...] + new_v
            out_ref[:, 2 * dim:] = v.astype(out_ref.dtype)
    else:
        def kernel(x_ref, wq_ref, wk_ref, wv_ref,
                   bqb_ref, bkb_ref, bvb_ref, out_ref):
            x = x_ref[...].astype(compute_dtype)
            dim = wq_ref.shape[1]
            q = jnp.dot(x, wq_ref[...], preferred_element_type=f32) \
                + bqb_ref[...]
            out_ref[:, :dim] = q.astype(out_ref.dtype)
            k = jnp.dot(x, wk_ref[...], preferred_element_type=f32) \
                + bkb_ref[...]
            out_ref[:, dim:2 * dim] = k.astype(out_ref.dtype)
            v = jnp.dot(x, wv_ref[...], preferred_element_type=f32) \
                + bvb_ref[...]
            out_ref[:, 2 * dim:] = v.astype(out_ref.dtype)

    return kernel


def _vmem_estimate(tile_m, dim, r_pad, x_bytes, c_bytes, o_bytes, weight_bufs):
    """Conservative VMEM-use estimate, including f32 dot intermediates and
    internal scratch headroom."""
    return (2 * tile_m * dim * x_bytes                      # x tile (2-buf)
            + 2 * tile_m * 3 * dim * o_bytes                # out tile (2-buf)
            + weight_bufs * (3 * dim * dim * c_bytes        # Wq/Wk/Wv
                             + 3 * dim * 4                  # f32 biases
                             + (2 * dim * r_pad + 2 * r_pad * dim) * c_bytes)
            + tile_m * dim * (c_bytes + 4 * 4)              # x(bf16) + f32 temps
            + tile_m * 2 * r_pad * (4 + c_bytes)            # xa (f32 + bf16)
            + (6 << 20))                                    # Mosaic scratch


def _build_call(*, with_lora, tile_m, m, dim, r_pad, compute_dtype, out_dtype,
                weight_mode, vmem_limit, cost):
    def wspec(shape):
        # Grid-invariant operands (weights / bias / LoRA factors).
        if weight_mode is None:
            return pl.BlockSpec(shape, lambda i: (0, 0))
        return pl.BlockSpec(shape, lambda i: (0, 0), pipeline_mode=weight_mode)

    in_specs = [
        pl.BlockSpec((tile_m, dim), lambda i: (i, 0)),       # x tile
        wspec((dim, dim)),                                   # W_q
        wspec((dim, dim)),                                   # W_k
        wspec((dim, dim)),                                   # W_v
        wspec((1, dim)),                                     # bias_q (f32)
        wspec((1, dim)),                                     # bias_k (f32)
        wspec((1, dim)),                                     # bias_v (f32)
    ]
    if with_lora:
        in_specs += [
            wspec((dim, 2 * r_pad)),                         # [A_q | A_v] padded
            wspec((r_pad, dim)),                             # B_q padded
            wspec((r_pad, dim)),                             # B_v padded
        ]

    return pl.pallas_call(
        _make_kernel(with_lora, compute_dtype),
        out_shape=jax.ShapeDtypeStruct((m, 3 * dim), out_dtype),
        grid_spec=pltpu.PrefetchScalarGridSpec(
            num_scalar_prefetch=0,
            grid=(pl.cdiv(m, tile_m),),      # ragged last tile masked on store
            in_specs=in_specs,
            out_specs=pl.BlockSpec((tile_m, 3 * dim), lambda i: (i, 0)),
        ),
        compiler_params=pltpu.CompilerParams(
            dimension_semantics=("parallel",),   # shards M over v7x megacore
            vmem_limit_bytes=int(vmem_limit)),
        cost_estimate=cost,
    )


def lora_qkv(x, w_qkv, b_qkv, a_q, b_q, a_v, b_v, *, tile_m=None,
             compute_dtype=jnp.bfloat16, out_dtype=None, merge_lora=False):
    """x: (..., C).  Weights in (in, out) layout: w_qkv (C, 3C), b_qkv (3C,),
    a_q/a_v (C, r), b_q/b_v (r, C).  Matmuls run in `compute_dtype` with f32
    accumulation.  merge_lora=True folds the adapters into the base weights
    (inference-only; adapters must be frozen)."""
    orig_shape = x.shape
    dim = orig_shape[-1]
    r = a_q.shape[-1]
    out_dtype = x.dtype if out_dtype is None else out_dtype
    f32 = jnp.float32

    m = math.prod(orig_shape[:-1])
    # No wrapper-side cast/pad pass: reshape only (metadata op); the kernel
    # casts each tile and the grid handles the ragged last M tile.
    x2 = x.reshape(m, dim)

    # Split the fused qkv weight/bias into N-slices (keeps each matmul and each
    # sliced store lane-dense).
    wq = w_qkv[:, :dim]
    wk = w_qkv[:, dim:2 * dim]
    wv = w_qkv[:, 2 * dim:]
    if merge_lora:
        # Frozen adapters: fold rank-r updates into the base weights once.
        wq = wq.astype(f32) + a_q.astype(f32) @ b_q.astype(f32)
        wv = wv.astype(f32) + a_v.astype(f32) @ b_v.astype(f32)
    wq = wq.astype(compute_dtype)
    wk = wk.astype(compute_dtype)
    wv = wv.astype(compute_dtype)
    bq_bias = b_qkv[:dim].reshape(1, dim).astype(f32)
    bk_bias = b_qkv[dim:2 * dim].reshape(1, dim).astype(f32)
    bv_bias = b_qkv[2 * dim:].reshape(1, dim).astype(f32)

    args = [x2, wq, wk, wv, bq_bias, bk_bias, bv_bias]
    r_pad = 0
    if not merge_lora:
        # Lane-align the fused A projection: A_q occupies lanes [0, r_pad),
        # A_v lanes [r_pad, 2*r_pad) -> the xa slices in the kernel are
        # lane-group aligned (no XLU rotate on the intermediate).
        r_pad = _round_up(r, 128)
        a_cat = jnp.concatenate(
            [jnp.pad(a_q, ((0, 0), (0, r_pad - r))),
             jnp.pad(a_v, ((0, 0), (0, r_pad - r)))],
            axis=1).astype(compute_dtype)                       # (C, 2*r_pad)
        bq_w = jnp.pad(b_q, ((0, r_pad - r), (0, 0))).astype(compute_dtype)
        bv_w = jnp.pad(b_v, ((0, r_pad - r), (0, 0))).astype(compute_dtype)
        args += [a_cat, bq_w, bv_w]

    # ---- generation-aware tile / VMEM sizing -------------------------------
    x_bytes = jnp.dtype(x.dtype).itemsize
    c_bytes = jnp.dtype(compute_dtype).itemsize
    o_bytes = jnp.dtype(out_dtype).itemsize

    vmem_cap = _vmem_capacity_bytes()
    vmem_budget = vmem_cap - (8 << 20)          # headroom for compiler scratch
    weight_mode = _single_buffer_mode()         # pl.Buffered(1) if supported
    weight_bufs = 1 if weight_mode is not None else 2

    if tile_m is None:
        tile_m = 512 if vmem_cap >= (96 << 20) else 256   # v5e/v6e vs v7x
    # bf16-native M granularity (16 rows per sublane group).
    tile_m = max(16, min(_round_up(tile_m, 16), _round_up(m, 16)))
    while tile_m > 16 and _vmem_estimate(tile_m, dim, r_pad, x_bytes, c_bytes,
                                         o_bytes, weight_bufs) > vmem_budget:
        tile_m = max(16, _round_up(tile_m // 2, 16))

    vmem_limit = int(min(max(_vmem_estimate(tile_m, dim, r_pad, x_bytes,
                                            c_bytes, o_bytes, weight_bufs),
                             16 << 20),
                         vmem_budget))

    # ---- cost estimate for the XLA scheduler -------------------------------
    flops = 2 * m * dim * (3 * dim)
    bytes_accessed = (m * dim * x_bytes
                      + 3 * dim * dim * c_bytes + 3 * dim * 4
                      + m * 3 * dim * o_bytes)
    if not merge_lora:
        flops += 2 * m * dim * (2 * r_pad) + 2 * m * (2 * r_pad) * dim
        bytes_accessed += (2 * dim * r_pad + 2 * r_pad * dim) * c_bytes
    cost = pl.CostEstimate(flops=flops, transcendentals=0,
                           bytes_accessed=bytes_accessed)

    call = _build_call(with_lora=not merge_lora, tile_m=tile_m, m=m, dim=dim,
                       r_pad=r_pad, compute_dtype=compute_dtype,
                       out_dtype=out_dtype, weight_mode=weight_mode,
                       vmem_limit=vmem_limit, cost=cost)
    out = call(*args)
    return out.reshape(*orig_shape[:-1], 3 * dim)


def _reference(x, w_qkv, b_qkv, a_q, b_q, a_v, b_v):
    dim = x.shape[-1]
    qkv = jnp.einsum("...c,co->...o", x, w_qkv) + b_qkv
    new_q = jnp.einsum("...r,rc->...c",
                       jnp.einsum("...c,cr->...r", x, a_q), b_q)
    new_v = jnp.einsum("...r,rc->...c",
                       jnp.einsum("...c,cr->...r", x, a_v), b_v)
    qkv = qkv.at[..., :dim].add(new_q)
    qkv = qkv.at[..., 2 * dim:].add(new_v)
    return qkv


if __name__ == "__main__":
    key = jax.random.PRNGKey(0)
    ks = jax.random.split(key, 7)

    B, W1, H, W, C = 2, 2, 4, 4, 32    # 5-D channel-last activations, dim = 32
    R = 4                              # LoRA rank

    x = jax.random.normal(ks[0], (B, W1, H, W, C), dtype=jnp.float32)

    # Parameters stored in (in, out) layout for the kernel.
    w_qkv = jax.random.normal(ks[1], (C, 3 * C), dtype=jnp.float32) * 0.05
    b_qkv = jax.random.normal(ks[2], (3 * C,), dtype=jnp.float32) * 0.05
    a_q = jax.random.normal(ks[3], (C, R), dtype=jnp.float32) * 0.05
    b_q = jax.random.normal(ks[4], (R, C), dtype=jnp.float32) * 0.05
    a_v = jax.random.normal(ks[5], (C, R), dtype=jnp.float32) * 0.05
    b_v = jax.random.normal(ks[6], (R, C), dtype=jnp.float32) * 0.05

    # Reference on bf16-rounded operands (kernel computes in bf16 with f32
    # accumulation; the rank-r intermediate gets one extra bf16 rounding).
    bf = lambda a: a.astype(jnp.bfloat16).astype(jnp.float32)
    ref = _reference(bf(x), bf(w_qkv), b_qkv, bf(a_q), bf(b_q), bf(a_v), bf(b_v))

    # Default (training-compatible, unmerged LoRA) path.
    out = jax.block_until_ready(lora_qkv(x, w_qkv, b_qkv, a_q, b_q, a_v, b_v))
    assert out.shape == (B, W1, H, W, 3 * C)
    assert jnp.allclose(out, ref, atol=2e-2, rtol=2e-2), "mismatch vs reference"

    # Merged (frozen-adapter / inference) path.
    out_m = jax.block_until_ready(
        lora_qkv(x, w_qkv, b_qkv, a_q, b_q, a_v, b_v, merge_lora=True))
    assert jnp.allclose(out_m, ref, atol=2e-2, rtol=2e-2), \
        "merged-LoRA path mismatch"

    print("KERNEL_OK")
</pallas_src>

<mosaic_0001>
module attributes {stable_mosaic.version = 11 : i64} {
  func.func @kernel(%arg0: i32, %arg1: memref<64x32xf32, #tpu.memory_space<vmem>>, %arg2: memref<32x32xbf16, #tpu.memory_space<vmem>>, %arg3: memref<32x32xbf16, #tpu.memory_space<vmem>>, %arg4: memref<32x32xbf16, #tpu.memory_space<vmem>>, %arg5: memref<1x32xf32, #tpu.memory_space<vmem>>, %arg6: memref<1x32xf32, #tpu.memory_space<vmem>>, %arg7: memref<1x32xf32, #tpu.memory_space<vmem>>, %arg8: memref<32x256xbf16, #tpu.memory_space<vmem>>, %arg9: memref<128x32xbf16, #tpu.memory_space<vmem>>, %arg10: memref<128x32xbf16, #tpu.memory_space<vmem>>, %arg11: memref<64x96xf32, #tpu.memory_space<vmem>>) attributes {dimension_semantics = [#tpu.dimension_semantics<parallel>], iteration_bounds = array<i64: 1>, scalar_prefetch = 0 : i64, scratch_operands = 0 : i64, tpu.core_type = #tpu.core_type<tc>, window_params = [{transform_indices = @transform_0, window_bounds = array<i64: 64, 32>}, {pipeline_mode = #tpu.pipeline_mode<synchronous>, transform_indices = @transform_1, window_bounds = array<i64: 32, 32>}, {pipeline_mode = #tpu.pipeline_mode<synchronous>, transform_indices = @transform_2, window_bounds = array<i64: 32, 32>}, {pipeline_mode = #tpu.pipeline_mode<synchronous>, transform_indices = @transform_3, window_bounds = array<i64: 32, 32>}, {pipeline_mode = #tpu.pipeline_mode<synchronous>, transform_indices = @transform_4, window_bounds = array<i64: 1, 32>}, {pipeline_mode = #tpu.pipeline_mode<synchronous>, transform_indices = @transform_5, window_bounds = array<i64: 1, 32>}, {pipeline_mode = #tpu.pipeline_mode<synchronous>, transform_indices = @transform_6, window_bounds = array<i64: 1, 32>}, {pipeline_mode = #tpu.pipeline_mode<synchronous>, transform_indices = @transform_7, window_bounds = array<i64: 32, 256>}, {pipeline_mode = #tpu.pipeline_mode<synchronous>, transform_indices = @transform_8, window_bounds = array<i64: 128, 32>}, {pipeline_mode = #tpu.pipeline_mode<synchronous>, transform_indices = @transform_9, window_bounds = array<i64: 128, 32>}, {transform_indices = @transform_10, window_bounds = array<i64: 64, 96>}]} {
    %c0 = arith.constant 0 : index
    %c0_0 = arith.constant 0 : index
    %0 = vector.load %arg1[%c0, %c0_0] : memref<64x32xf32, #tpu.memory_space<vmem>>, vector<64x32xf32>
    %1 = arith.truncf %0 : vector<64x32xf32> to vector<64x32xbf16>
    %c0_1 = arith.constant 0 : index
    %c0_2 = arith.constant 0 : index
    %2 = vector.load %arg8[%c0_1, %c0_2] : memref<32x256xbf16, #tpu.memory_space<vmem>>, vector<32x256xbf16>
    %cst = arith.constant dense<0.000000e+00> : vector<64x256xf32>
    %3 = tpu.matmul %1, %2, %cst {dimension_numbers = #tpu.dot_dimension_numbers<[1], [0], [0], [1], [0, 0, 1, 1], [], []>} : vector<64x32xbf16>, vector<32x256xbf16>, vector<64x256xf32> -> vector<64x256xf32>
    %4 = arith.truncf %3 : vector<64x256xf32> to vector<64x256xbf16>
    %5 = vector.extract_strided_slice %4 {offsets = [0, 0], sizes = [64, 128], strides = [1, 1]} : vector<64x256xbf16> to vector<64x128xbf16>
    %c0_3 = arith.constant 0 : index
    %c0_4 = arith.constant 0 : index
    %6 = vector.load %arg9[%c0_3, %c0_4] : memref<128x32xbf16, #tpu.memory_space<vmem>>, vector<128x32xbf16>
    %cst_5 = arith.constant dense<0.000000e+00> : vector<64x32xf32>
    %7 = tpu.matmul %5, %6, %cst_5 {dimension_numbers = #tpu.dot_dimension_numbers<[1], [0], [0], [1], [0, 0, 1, 1], [], []>} : vector<64x128xbf16>, vector<128x32xbf16>, vector<64x32xf32> -> vector<64x32xf32>
    %8 = vector.extract_strided_slice %4 {offsets = [0, 128], sizes = [64, 128], strides = [1, 1]} : vector<64x256xbf16> to vector<64x128xbf16>
    %c0_6 = arith.constant 0 : index
    %c0_7 = arith.constant 0 : index
    %9 = vector.load %arg10[%c0_6, %c0_7] : memref<128x32xbf16, #tpu.memory_space<vmem>>, vector<128x32xbf16>
    %cst_8 = arith.constant dense<0.000000e+00> : vector<64x32xf32>
    %10 = tpu.matmul %8, %9, %cst_8 {dimension_numbers = #tpu.dot_dimension_numbers<[1], [0], [0], [1], [0, 0, 1, 1], [], []>} : vector<64x128xbf16>, vector<128x32xbf16>, vector<64x32xf32> -> vector<64x32xf32>
    %c0_9 = arith.constant 0 : index
    %c0_10 = arith.constant 0 : index
    %11 = vector.load %arg2[%c0_9, %c0_10] : memref<32x32xbf16, #tpu.memory_space<vmem>>, vector<32x32xbf16>
    %cst_11 = arith.constant dense<0.000000e+00> : vector<64x32xf32>
    %12 = tpu.matmul %1, %11, %cst_11 {dimension_numbers = #tpu.dot_dimension_numbers<[1], [0], [0], [1], [0, 0, 1, 1], [], []>} : vector<64x32xbf16>, vector<32x32xbf16>, vector<64x32xf32> -> vector<64x32xf32>
    %c0_12 = arith.constant 0 : index
    %c0_13 = arith.constant 0 : index
    %13 = vector.load %arg5[%c0_12, %c0_13] : memref<1x32xf32, #tpu.memory_space<vmem>>, vector<1x32xf32>
    %14 = vector.broadcast %13 : vector<1x32xf32> to vector<64x32xf32>
    %15 = arith.addf %12, %14 : vector<64x32xf32>
    %16 = arith.addf %15, %7 : vector<64x32xf32>
    %c0_14 = arith.constant 0 : index
    %c0_15 = arith.constant 0 : index
    %17 = vector.load %arg11[%c0_14, %c0_15] : memref<64x96xf32, #tpu.memory_space<vmem>>, vector<64x32xf32>
    tpu.vector_store %arg11[%c0_14, %c0_15], %16 {strides = array<i32>} : memref<64x96xf32, #tpu.memory_space<vmem>>, vector<64x32xf32>,
    %c0_16 = arith.constant 0 : index
    %c0_17 = arith.constant 0 : index
    %18 = vector.load %arg3[%c0_16, %c0_17] : memref<32x32xbf16, #tpu.memory_space<vmem>>, vector<32x32xbf16>
    %cst_18 = arith.constant dense<0.000000e+00> : vector<64x32xf32>
    %19 = tpu.matmul %1, %18, %cst_18 {dimension_numbers = #tpu.dot_dimension_numbers<[1], [0], [0], [1], [0, 0, 1, 1], [], []>} : vector<64x32xbf16>, vector<32x32xbf16>, vector<64x32xf32> -> vector<64x32xf32>
    %c0_19 = arith.constant 0 : index
    %c0_20 = arith.constant 0 : index
    %20 = vector.load %arg6[%c0_19, %c0_20] : memref<1x32xf32, #tpu.memory_space<vmem>>, vector<1x32xf32>
    %21 = vector.broadcast %20 : vector<1x32xf32> to vector<64x32xf32>
    %22 = arith.addf %19, %21 : vector<64x32xf32>
    %c0_21 = arith.constant 0 : index
    %c32 = arith.constant 32 : index
    %23 = vector.load %arg11[%c0_21, %c32] : memref<64x96xf32, #tpu.memory_space<vmem>>, vector<64x32xf32>
    tpu.vector_store %arg11[%c0_21, %c32], %22 {strides = array<i32>} : memref<64x96xf32, #tpu.memory_space<vmem>>, vector<64x32xf32>,
    %c0_22 = arith.constant 0 : index
    %c0_23 = arith.constant 0 : index
    %24 = vector.load %arg4[%c0_22, %c0_23] : memref<32x32xbf16, #tpu.memory_space<vmem>>, vector<32x32xbf16>
    %cst_24 = arith.constant dense<0.000000e+00> : vector<64x32xf32>
    %25 = tpu.matmul %1, %24, %cst_24 {dimension_numbers = #tpu.dot_dimension_numbers<[1], [0], [0], [1], [0, 0, 1, 1], [], []>} : vector<64x32xbf16>, vector<32x32xbf16>, vector<64x32xf32> -> vector<64x32xf32>
    %c0_25 = arith.constant 0 : index
    %c0_26 = arith.constant 0 : index
    %26 = vector.load %arg7[%c0_25, %c0_26] : memref<1x32xf32, #tpu.memory_space<vmem>>, vector<1x32xf32>
    %27 = vector.broadcast %26 : vector<1x32xf32> to vector<64x32xf32>
    %28 = arith.addf %25, %27 : vector<64x32xf32>
    %29 = arith.addf %28, %10 : vector<64x32xf32>
    %c0_27 = arith.constant 0 : index
    %c64 = arith.constant 64 : index
    %30 = vector.load %arg11[%c0_27, %c64] : memref<64x96xf32, #tpu.memory_space<vmem>>, vector<64x32xf32>
    tpu.vector_store %arg11[%c0_27, %c64], %29 {strides = array<i32>} : memref<64x96xf32, #tpu.memory_space<vmem>>, vector<64x32xf32>,
    return
  }
  func.func @transform_0(%arg0: i32) -> (i32, i32) {
    %c0_i32 = arith.constant 0 : i32
    %c0_i32_0 = arith.constant 0 : i32
    return %arg0, %c0_i32 : i32, i32
  }
  func.func @transform_1(%arg0: i32) -> (i32, i32) {
    %c0_i32 = arith.constant 0 : i32
    %c0_i32_0 = arith.constant 0 : i32
    %c0_i32_1 = arith.constant 0 : i32
    return %c0_i32, %c0_i32_0 : i32, i32
  }
  func.func @transform_2(%arg0: i32) -> (i32, i32) {
    %c0_i32 = arith.constant 0 : i32
    %c0_i32_0 = arith.constant 0 : i32
    %c0_i32_1 = arith.constant 0 : i32
    return %c0_i32, %c0_i32_0 : i32, i32
  }
  func.func @transform_3(%arg0: i32) -> (i32, i32) {
    %c0_i32 = arith.constant 0 : i32
    %c0_i32_0 = arith.constant 0 : i32
    %c0_i32_1 = arith.constant 0 : i32
    return %c0_i32, %c0_i32_0 : i32, i32
  }
  func.func @transform_4(%arg0: i32) -> (i32, i32) {
    %c0_i32 = arith.constant 0 : i32
    %c0_i32_0 = arith.constant 0 : i32
    %c0_i32_1 = arith.constant 0 : i32
    return %c0_i32, %c0_i32_0 : i32, i32
  }
  func.func @transform_5(%arg0: i32) -> (i32, i32) {
    %c0_i32 = arith.constant 0 : i32
    %c0_i32_0 = arith.constant 0 : i32
    %c0_i32_1 = arith.constant 0 : i32
    return %c0_i32, %c0_i32_0 : i32, i32
  }
  func.func @transform_6(%arg0: i32) -> (i32, i32) {
    %c0_i32 = arith.constant 0 : i32
    %c0_i32_0 = arith.constant 0 : i32
    %c0_i32_1 = arith.constant 0 : i32
    return %c0_i32, %c0_i32_0 : i32, i32
  }
  func.func @transform_7(%arg0: i32) -> (i32, i32) {
    %c0_i32 = arith.constant 0 : i32
    %c0_i32_0 = arith.constant 0 : i32
    %c0_i32_1 = arith.constant 0 : i32
    return %c0_i32, %c0_i32_0 : i32, i32
  }
  func.func @transform_8(%arg0: i32) -> (i32, i32) {
    %c0_i32 = arith.constant 0 : i32
    %c0_i32_0 = arith.constant 0 : i32
    %c0_i32_1 = arith.constant 0 : i32
    return %c0_i32, %c0_i32_0 : i32, i32
  }
  func.func @transform_9(%arg0: i32) -> (i32, i32) {
    %c0_i32 = arith.constant 0 : i32
    %c0_i32_0 = arith.constant 0 : i32
    %c0_i32_1 = arith.constant 0 : i32
    return %c0_i32, %c0_i32_0 : i32, i32
  }
  func.func @transform_10(%arg0: i32) -> (i32, i32) {
    %c0_i32 = arith.constant 0 : i32
    %c0_i32_0 = arith.constant 0 : i32
    return %arg0, %c0_i32 : i32, i32
  }
}

</mosaic_0001>

<bundles_post_ra>
// kernel: tpu_custom_call.1
= control target key start
LH: loop header
LB: loop body
LE: loop exit
PB: predicated region body
PF: predicated region fallthrough
CT: control target
= control target key end

     0   :  { %v1072_v2 = vmov 0   ;;  %vm73_vm0 = vcmask 261120   ;;  %s1328_s0 = inlined_call_operand.vmem [shape: f32[64,32], index: 0, kind: input, shape index: {}]   ;;  %s1329_s1 = inlined_call_operand.vmem [shape: bf16[32,32], index: 1, kind: input, shape index: {}]   ;;  %s1330_s2 = inlined_call_operand.vmem [shape: bf16[32,32], index: 2, kind: input, shape index: {}]   ;;  %s1331_s3 = inlined_call_operand.vmem [shape: bf16[32,32], index: 3, kind: input, shape index: {}]   ;;  %s1332_s4 = inlined_call_operand.vmem [shape: f32[1,32], index: 4, kind: input, shape index: {}]   ;;  %s1333_s5 = inlined_call_operand.vmem [shape: f32[1,32], index: 5, kind: input, shape index: {}]   ;;  %s1334_s6 = inlined_call_operand.vmem [shape: f32[1,32], index: 6, kind: input, shape index: {}]   ;;  %s1335_s7 = inlined_call_operand.vmem [shape: bf16[32,256], index: 7, kind: input, shape index: {}]   ;;  %s1336_s8 = inlined_call_operand.vmem [shape: bf16[128,32], index: 8, kind: input, shape index: {}]   ;;  %s1337_s9 = inlined_call_operand.vmem [shape: bf16[128,32], index: 9, kind: input, shape index: {}]   ;;  %s1338_s10 = inlined_call_operand.hbm [shape: f32[64,96], index: 10, kind: output, shape index: {}]  }
   0x1   :  { %v1020_v0 = vld [vmem:[%s1335_s7 + $0x4] ss:$8 sps:$4 sm:$0xff]   ;;  %v1022_v1 = vld [vmem:[%s1335_s7] ss:$8 sps:$4 sm:$0xff]   ;;  %118 = vmatprep.mubr.bf16.mxu1 %v1072_v2  ;;  %v1023_v3 = vld [vmem:[%s1335_s7 + $0x14] ss:$8 sps:$4 sm:$0xff]  }
   0x2   :  { %86 = vmatprep.subr.bf16.mxu1 %v1020_v0  ;;  %v1025_v4 = vld [vmem:[%s1335_s7 + $0x10] ss:$8 sps:$4 sm:$0xff]   ;;  %v37_v5 = vld [vmem:[%s1328_s0] sm:$0xff]  ;;  %v38_v6 = vld [vmem:[%s1328_s0 + $0x8] sm:$0xff] }
   0x3   :  { %87 = vmatpush1.bf16.msra.mxu1 %v1022_v1  ;;  %v1151_v7 = vpack.c.bf16 %v38_v6, %v37_v5  ;;  %v1026_v8 = vld [vmem:[%s1336_s8] sm:$0xff]   ;;  %v1028_v10 = vld [vmem:[%s1336_s8 + $0x8] sm:$0xff]   ;;  %v39_v11 = vld [vmem:[%s1328_s0 + $0x10] sm:$0xff] }
   0x4   :  { %88 = vmatprep.subr.bf16.mxu1 %v1023_v3  ;;  %v1027_v9 = vld [vmem:[%s1337_s9] sm:$0xff]   ;;  %v1029_v12 = vld [vmem:[%s1337_s9 + $0x8] sm:$0xff]   ;;  %v40_v13 = vld [vmem:[%s1328_s0 + $0x18] sm:$0xff] }
   0x5   :  { %922 = vmatprep.subr.bf16.mxu0 %v1027_v9  ;;  %v1031_v14 = vld [vmem:[%s1337_s9 + $0x10] sm:$0xff]   ;;  %v1179_v16 = vpack.c.bf16 %v40_v13, %v39_v11  ;;  %v1032_v17 = vld [vmem:[%s1336_s8 + $0x18] sm:$0xff]   ;;  %v41_v19 = vld [vmem:[%s1328_s0 + $0x20] sm:$0xff] }
   0x6   :  { %923 = vmatpush3.bf16.msra.mxu0 %v1027_v9  ;;  %v1030_v15 = vld [vmem:[%s1336_s8 + $0x10] sm:$0xff]   ;;  %v1033_v18 = vld [vmem:[%s1337_s9 + $0x18] sm:$0xff]   ;;  %v42_v20 = vld [vmem:[%s1328_s0 + $0x28] sm:$0xff] }
   0x7   :  { %89 = vmatpush1.bf16.msra.mxu1 %v1025_v4  ;;  %924 = vmatprep.subr.bf16.mxu0 %v1029_v12  ;;  %v1035_v21 = vld [vmem:[%s1337_s9 + $0x20] sm:$0xff]   ;;  %v1201_v23 = vpack.c.bf16 %v42_v20, %v41_v19 }
   0x8   :  { %898 = vmatprep.subr.bf16.mxu1 %v1026_v8  ;;  %v1034_v22 = vld [vmem:[%s1336_s8 + $0x20] sm:$0xff]  }
   0xa   :  { %815 = vmatmul.mubr.msk.bf16.vlgmr.msra.gmra.mrb[0].mxu1 %vm73_vm0, %v1151_v7  ;;  %925 = vmatpush3.bf16.msra.mxu0 %v1029_v12 }
   0xb   :  { %128 = vmatprep.mubr.bf16.mxu1 %v1072_v2  ;;  %899 = vmatpush3.bf16.msra.mxu1 %v1026_v8 }
   0xc   :  { %900 = vmatprep.subr.bf16.mxu1 %v1028_v10  ;;  %926 = vmatprep.subr.bf16.mxu0 %v1031_v14 }
   0xe   :  { %927 = vmatpush3.bf16.msra.mxu0 %v1031_v14 }
   0xf   :  { %901 = vmatpush3.bf16.msra.mxu1 %v1028_v10  ;;  %928 = vmatprep.subr.bf16.mxu0 %v1033_v18 }
  0x10   :  { %902 = vmatprep.subr.bf16.mxu1 %v1030_v15 }
  0x12   :  { %816 = vmatmul.mubr.msk.bf16.gmra.mrb[4].mxu1 %vm73_vm0, %v1179_v16  ;;  %929 = vmatpush3.bf16.msra.mxu0 %v1033_v18 }
  0x13   :  { %138 = vmatprep.mubr.bf16.mxu1 %v1072_v2  ;;  %903 = vmatpush3.bf16.msra.mxu1 %v1030_v15 }
  0x14   :  { %904 = vmatprep.subr.bf16.mxu1 %v1032_v17  ;;  %930 = vmatprep.subr.bf16.mxu0 %v1035_v21 }
  0x17   :  { %905 = vmatpush3.bf16.msra.mxu1 %v1032_v17 }
  0x18   :  { %15 = vsyncpa [#allocation3], 0  ;;  %906 = vmatprep.subr.bf16.mxu1 %v1034_v22  ;;  %931 = vmatpush3.bf16.msra.mxu0 %v1035_v21  ;;  %v43_v24 = vld [vmem:[%s1328_s0 + $0x30] sm:$0xff]  ;;  %v44_v25 = vld [vmem:[%s1328_s0 + $0x38] sm:$0xff]  ;;  %s1074_s17 = smov 64   ;;  %vm649_vm1 = vcmask 523520  }
  0x19   :  { %v1211_v26 = vpack.c.bf16 %v44_v25, %v43_v24  ;;  %v1036_v27 = vld [vmem:[%s1336_s8 + $0x28] sm:$0xff]   ;;  %v1038_v29 = vld [vmem:[%s1336_s8 + $0x30] sm:$0xff]   ;;  %v1040_v31 = vld [vmem:[%s1336_s8 + $0x38] sm:$0xff]   ;;  %vm786_vm2 = vcmask 785920  }
  0x1a   :  { %817 = vmatmul.mubr.msk.bf16.gmra.mrb[8].mxu1 %vm73_vm0, %v1201_v23  ;;  %v1037_v28 = vld [vmem:[%s1337_s9 + $0x28] sm:$0xff]   ;;  %v1039_v30 = vld [vmem:[%s1337_s9 + $0x30] sm:$0xff]   ;;  %v1041_v32 = vld [vmem:[%s1337_s9 + $0x38] sm:$0xff]  }
  0x1b   :  { %148 = vmatprep.mubr.bf16.mxu1 %v1072_v2  ;;  %907 = vmatpush3.bf16.msra.mxu1 %v1034_v22  ;;  %v1042_v33 = vld [vmem:[%s1330_s2] sm:$0xff]   ;;  %v1045_v46 = vld [vmem:[%s1329_s1 + $0x8] sm:$0xff]  }
  0x1c   :  { %908 = vmatprep.subr.bf16.mxu1 %v1036_v27  ;;  %932 = vmatprep.subr.bf16.mxu0 %v1037_v28  ;;  %v1043_v34 = vld [vmem:[%s1329_s1] sm:$0xff]   ;;  %v1044_v48 = vld [vmem:[%s1330_s2 + $0x8] sm:$0xff]  }
  0x1d   :  { %933 = vmatpush3.bf16.msra.mxu0 %v1037_v28  ;;  %v1046_v50 = vld [vmem:[%s1331_s3] sm:$0xff]   ;;  %v1047_v62 = vld [vmem:[%s1331_s3 + $0x8] sm:$0xff]  }
  0x1e   :  { %934 = vmatprep.subr.bf16.mxu0 %v1039_v30  ;;  %v835_v63 = vld [vmem:[%s1332_s4] ss:$0 sm:$0xff]  ;;  %s1073_s4 = smov 32  }
  0x1f   :  { %909 = vmatpush3.bf16.msra.mxu1 %v1036_v27  ;;  %v842_v0 = vld [vmem:[%s1333_s5] ss:$0 sm:$0xff] }
  0x20   :  { %910 = vmatprep.subr.bf16.mxu1 %v1038_v29 }
  0x21   :  { %935 = vmatpush3.bf16.msra.mxu0 %v1039_v30 }
  0x22   :  { %818 = vmatmul.mubr.msk.bf16.gmra.mrb[12].mxu1 %vm73_vm0, %v1211_v26  ;;  %936 = vmatprep.subr.bf16.mxu0 %v1041_v32 }
  0x23   :  { %911 = vmatpush3.bf16.msra.mxu1 %v1038_v29 }
  0x24   :  { %912 = vmatprep.subr.bf16.mxu1 %v1040_v31 }
  0x25   :  { %937 = vmatpush3.bf16.msra.mxu0 %v1041_v32  ;;  %v849_v32 = vld [vmem:[%s1334_s6] ss:$0 sm:$0xff]  ;;  %s1075_s6 = smov [#allocation2]  }
  0x26   :  { %958 = vmatprep.subr.bf16.mxu0 %v1042_v33  ;;  %s800_s18 = sshll.u32 %s1075_s6, 4  ;;  %s801_s18 = int_to_ptr.vmem [resolvable:$true] %s800_s18 }
  0x27   :  { %913 = vmatpush3.bf16.msra.mxu1 %v1040_v31  ;;  %s1048_s19 = scalar_lea.vmem %s801_s18, 1024  ;;  %p1053_p1 = scmp.lt.s32.totalorder %s801_s18, %s801_s18 }
  0x28   :  { %946 = vmatprep.subr.bf16.mxu1 %v1043_v34  ;;  %p1049_p0 = scmp.ne.s32.totalorder %s801_s18, %s1048_s19  ;;  %p1054_p2 = scmp.lt.s32.totalorder %s1048_s19, %s1048_s19 }
  0x2a   :  { %p1055_p3 = por %p1054_p2, %p1053_p1 }
  0x2c   :  { %p1056_p4 = pnand %p1055_p3, %p1049_p0 }
  0xdd   :  { %v120_v35 = vpop.f32.mrb[0].mxu1 }
  0xde   :  { %v122_v36 = vpop.f32.mrb[1].mxu1 }
  0xdf   :  { %v124_v37 = vpop.f32.mrb[2].mxu1 }
  0xe0   :  { %v159_v38 = vpack.c.bf16 %v124_v37, %v120_v35  ;;  %v126_v39 = vpop.f32.mrb[3].mxu1 }
  0xe1   :  { %v160_v40 = vpack.c.bf16 %v126_v39, %v122_v36 }
  0xe2   :  { %914 = vmatprep.mubr.bf16.mxu1 %v159_v38 }
  0xe3   :  { %938 = vmatprep.mubr.bf16.mxu0 %v160_v40 }
  0xe5   :  { %v130_v41 = vpop.f32.mrb[4].mxu1 }
  0xe6   :  { %v132_v42 = vpop.f32.mrb[5].mxu1 }
  0xe7   :  { %v134_v43 = vpop.f32.mrb[6].mxu1 }
  0xe8   :  { %v161_v44 = vpack.c.bf16 %v134_v43, %v130_v41  ;;  %v136_v45 = vpop.f32.mrb[7].mxu1 }
  0xe9   :  { %v162_v47 = vpack.c.bf16 %v136_v45, %v132_v42 }
  0xea   :  { %915 = vmatmul.mubr.bf16.vlgmr.msra.gmra.mrb[16].mxu1 %v161_v44 }
  0xeb   :  { %939 = vmatmul.mubr.bf16.vlgmr.msra.gmra.mrb[0].mxu0 %v162_v47  ;;  %947 = vmatpush3.bf16.msra.mxu1 %v1043_v34 }
  0xec   :  { %959 = vmatpush3.bf16.msra.mxu0 %v1042_v33  ;;  %948 = vmatprep.subr.bf16.mxu1 %v1045_v46 }
  0xed   :  { %v140_v49 = vpop.f32.mrb[8].mxu1  ;;  %960 = vmatprep.subr.bf16.mxu0 %v1044_v48 }
  0xee   :  { %v142_v51 = vpop.f32.mrb[9].mxu1 }
  0xef   :  { %v144_v52 = vpop.f32.mrb[10].mxu1  ;;  %949 = vmatpush3.bf16.msra.mxu1 %v1045_v46 }
  0xf0   :  { %v163_v53 = vpack.c.bf16 %v144_v52, %v140_v49  ;;  %v146_v54 = vpop.f32.mrb[11].mxu1  ;;  %961 = vmatpush3.bf16.msra.mxu0 %v1044_v48 }
  0xf1   :  { %v164_v55 = vpack.c.bf16 %v146_v54, %v142_v51  ;;  %970 = vmatprep.subr.bf16.mxu0 %v1046_v50 }
  0xf2   :  { %918 = vmatprep.mubr.bf16.mxu1 %v163_v53 }
  0xf3   :  { %942 = vmatprep.mubr.bf16.mxu0 %v164_v55 }
  0xf5   :  { %v150_v56 = vpop.f32.mrb[12].mxu1 }
  0xf6   :  { %v152_v57 = vpop.f32.mrb[13].mxu1 }
  0xf7   :  { %v154_v58 = vpop.f32.mrb[14].mxu1 }
  0xf8   :  { %v165_v59 = vpack.c.bf16 %v154_v58, %v150_v56  ;;  %v156_v60 = vpop.f32.mrb[15].mxu1 }
  0xf9   :  { %v166_v61 = vpack.c.bf16 %v156_v60, %v152_v57 }
  0xfa   :  { %919 = vmatmul.mubr.bf16.gmra.mrb[20].mxu1 %v165_v59 }
  0xfb   :  { %943 = vmatmul.mubr.bf16.gmra.mrb[4].mxu0 %v166_v61  ;;  %950 = vmatprep.mubr.msk.bf16.mxu1 %vm73_vm0, %v1151_v7 }
  0xfc   :  { %962 = vmatprep.mubr.msk.bf16.mxu0 %vm73_vm0, %v1151_v7 }
 0x102   :  { %951 = vmatmul.mubr.msk.bf16.vlgmr.msra.gmra.mrb[16].mxu1 %vm73_vm0, %v1179_v16 }
 0x103   :  { %963 = vmatmul.mubr.msk.bf16.vlgmr.msra.gmra.mrb[8].mxu0 %vm73_vm0, %v1179_v16  ;;  %954 = vmatprep.mubr.msk.bf16.mxu1 %vm73_vm0, %v1201_v23 }
 0x104   :  { %971 = vmatpush3.bf16.msra.mxu0 %v1046_v50  ;;  %966 = vmatprep.mubr.msk.bf16.mxu0 %vm73_vm0, %v1201_v23 }
 0x105   :  { %972 = vmatprep.subr.bf16.mxu0 %v1047_v62 }
 0x108   :  { %973 = vmatpush3.bf16.msra.mxu0 %v1047_v62 }
 0x10a   :  { %955 = vmatmul.mubr.msk.bf16.gmra.mrb[20].mxu1 %vm73_vm0, %v1211_v26 }
 0x10b   :  { %967 = vmatmul.mubr.msk.bf16.gmra.mrb[12].mxu0 %vm73_vm0, %v1211_v26 }
 0x10c   :  { %974 = vmatprep.mubr.msk.bf16.mxu0 %vm73_vm0, %v1151_v7 }
 0x113   :  { %975 = vmatmul.mubr.msk.bf16.vlgmr.msra.gmra.mrb[0].mxu0 %vm73_vm0, %v1179_v16 }
 0x114   :  { %978 = vmatprep.mubr.msk.bf16.mxu0 %vm73_vm0, %v1201_v23 }
 0x11b   :  { %979 = vmatmul.mubr.msk.bf16.gmra.mrb[4].mxu0 %vm73_vm0, %v1211_v26 }
 0x1d5   :  { %v952_v1 = vpop.f32.mrb[16].mxu1 }
 0x1d6   :  { %v491_v2 = vadd.f32 %v952_v1, %v835_v63  ;;  %v482_v3 = vpop.f32.mrb[17].mxu1  ;;  %v964_v4 = vpop.f32.mrb[8].mxu0 }
 0x1d7   :  { %v483_v5 = vadd.f32 %v835_v63, %v482_v3  ;;  %v595_v6 = vadd.f32 %v964_v4, %v842_v0  ;;  %v953_v7 = vpop.f32.mrb[18].mxu1  ;;  %v586_v8 = vpop.f32.mrb[9].mxu0 }
 0x1d8   :  { %523 = vst.msk [vmem:[#allocation2 + $0x10] sm:$0xff] %vm73_vm0, %v491_v2  ;;  %v494_v9 = vadd.f32 %v953_v7, %v835_v63  ;;  %v587_v10 = vadd.f32 %v842_v0, %v586_v8  ;;  %v485_v11 = vpop.f32.mrb[19].mxu1  ;;  %v965_v12 = vpop.f32.mrb[10].mxu0 }
 0x1d9   :  { %521 = vst.msk [vmem:[#allocation2] sm:$0xff] %vm73_vm0, %v483_v5  ;;  %v486_v13 = vadd.f32 %v835_v63, %v485_v11  ;;  %629 = vrot.lane.b32.xlu1 %v595_v6, %s1073_s4  ;;  %v589_v14 = vpop.f32.mrb[11].mxu0  ;;  %v598_v15 = vadd.f32 %v965_v12, %v842_v0 }
 0x1da   :  { %524 = vst.msk [vmem:[#allocation2 + $0x18] sm:$0xff] %vm73_vm0, %v494_v9  ;;  %625 = vrot.lane.b32.xlu0 %v587_v10, %s1073_s4  ;;  %v590_v16 = vadd.f32 %v842_v0, %v589_v14 }
 0x1db   :  { %522 = vst.msk [vmem:[#allocation2 + $0x8] sm:$0xff] %vm73_vm0, %v486_v13 }
 0x1dd   :  { %v956_v17 = vpop.f32.mrb[20].mxu1  ;;  %631 = vrot.lane.b32.xlu1 %v598_v15, %s1073_s4 }
 0x1de   :  { %v507_v18 = vadd.f32 %v956_v17, %v835_v63  ;;  %v498_v19 = vpop.f32.mrb[21].mxu1  ;;  %v968_v20 = vpop.f32.mrb[12].mxu0  ;;  %627 = vrot.lane.b32.xlu0 %v590_v16, %s1073_s4 }
 0x1df   :  { %v499_v21 = vadd.f32 %v835_v63, %v498_v19  ;;  %v611_v22 = vadd.f32 %v968_v20, %v842_v0  ;;  %v957_v23 = vpop.f32.mrb[22].mxu1  ;;  %v602_v24 = vpop.f32.mrb[13].mxu0 }
 0x1e0   :  { %527 = vst.msk [vmem:[#allocation2 + $0x30] sm:$0xff] %vm73_vm0, %v507_v18  ;;  %v510_v25 = vadd.f32 %v957_v23, %v835_v63  ;;  %v501_v26 = vpop.f32.mrb[23].mxu1  ;;  %v969_v27 = vpop.f32.mrb[14].mxu0  ;;  %v603_v31 = vadd.f32 %v842_v0, %v602_v24 }
 0x1e1   :  { %525 = vst.msk [vmem:[#allocation2 + $0x20] sm:$0xff] %vm73_vm0, %v499_v21  ;;  %v502_v28 = vadd.f32 %v835_v63, %v501_v26  ;;  %v614_v29 = vadd.f32 %v969_v27, %v842_v0  ;;  %v605_v30 = vpop.f32.mrb[15].mxu0 }
 0x1e2   :  { %528 = vst.msk [vmem:[#allocation2 + $0x38] sm:$0xff] %vm73_vm0, %v510_v25  ;;  %637 = vrot.lane.b32.xlu0 %v611_v22, %s1073_s4  ;;  %v606_v33 = vadd.f32 %v842_v0, %v605_v30 }
 0x1e3   :  { %526 = vst.msk [vmem:[#allocation2 + $0x28] sm:$0xff] %vm73_vm0, %v502_v28  ;;  %639 = vrot.lane.b32.xlu1 %v614_v29, %s1073_s4 }
 0x1e6   :  { %v976_v34 = vpop.f32.mrb[0].mxu0  ;;  %633 = vrot.lane.b32.xlu0 %v603_v31, %s1073_s4 }
 0x1e7   :  { %v724_v35 = vadd.f32 %v976_v34, %v849_v32  ;;  %v715_v36 = vpop.f32.mrb[1].mxu0  ;;  %635 = vrot.lane.b32.xlu1 %v606_v33, %s1073_s4 }
 0x1e8   :  { %v977_v37 = vpop.f32.mrb[2].mxu0  ;;  %v716_v40 = vadd.f32 %v849_v32, %v715_v36 }
 0x1e9   :  { %v727_v38 = vadd.f32 %v977_v37, %v849_v32  ;;  %v718_v39 = vpop.f32.mrb[3].mxu0 }
 0x1ea   :  { %766 = vrot.lane.b32.xlu0 %v724_v35, %s1074_s17  ;;  %v719_v41 = vadd.f32 %v849_v32, %v718_v39 }
 0x1eb   :  { %768 = vrot.lane.b32.xlu1 %v727_v38, %s1074_s17 }
 0x1ee   :  { %v980_v42 = vpop.f32.mrb[4].mxu0  ;;  %762 = vrot.lane.b32.xlu0 %v716_v40, %s1074_s17 }
 0x1ef   :  { %v731_v43 = vpop.f32.mrb[5].mxu0  ;;  %764 = vrot.lane.b32.xlu1 %v719_v41, %s1074_s17  ;;  %v740_v48 = vadd.f32 %v980_v42, %v849_v32 }
 0x1f0   :  { %v732_v44 = vadd.f32 %v849_v32, %v731_v43  ;;  %v981_v45 = vpop.f32.mrb[6].mxu0 }
 0x1f1   :  { %v734_v46 = vpop.f32.mrb[7].mxu0  ;;  %v743_v49 = vadd.f32 %v981_v45, %v849_v32 }
 0x1f2   :  { %v735_v47 = vadd.f32 %v849_v32, %v734_v46  ;;  %770 = vrot.lane.b32.xlu0 %v732_v44, %s1074_s17 }
 0x1f4   :  { %772 = vrot.lane.b32.xlu1 %v735_v47, %s1074_s17 }
 0x1f6   :  { %774 = vrot.lane.b32.xlu0 %v740_v48, %s1074_s17 }
 0x1f8   :  { %776 = vrot.lane.b32.xlu1 %v743_v49, %s1074_s17 }
 0x24b   :  { %v630_v50 = vpop.permute.xlu1 %629 }
 0x24c   :  { %652 = vst.msk [vmem:[#allocation2 + $0x10] sm:$0xff] %vm649_vm1, %v630_v50  ;;  %v626_v51 = vpop.permute.xlu0 %625 }
 0x24d   :  { %650 = vst.msk [vmem:[#allocation2] sm:$0xff] %vm649_vm1, %v626_v51 }
 0x24f   :  { %v632_v52 = vpop.permute.xlu1 %631 }
 0x250   :  { %653 = vst.msk [vmem:[#allocation2 + $0x18] sm:$0xff] %vm649_vm1, %v632_v52  ;;  %v628_v53 = vpop.permute.xlu0 %627 }
 0x251   :  { %651 = vst.msk [vmem:[#allocation2 + $0x8] sm:$0xff] %vm649_vm1, %v628_v53 }
 0x254   :  { %v638_v54 = vpop.permute.xlu0 %637 }
 0x255   :  { %656 = vst.msk [vmem:[#allocation2 + $0x30] sm:$0xff] %vm649_vm1, %v638_v54  ;;  %v640_v55 = vpop.permute.xlu1 %639 }
 0x256   :  { %657 = vst.msk [vmem:[#allocation2 + $0x38] sm:$0xff] %vm649_vm1, %v640_v55 }
 0x258   :  { %v634_v56 = vpop.permute.xlu0 %633 }
 0x259   :  { %654 = vst.msk [vmem:[#allocation2 + $0x20] sm:$0xff] %vm649_vm1, %v634_v56  ;;  %v636_v57 = vpop.permute.xlu1 %635 }
 0x25a   :  { %655 = vst.msk [vmem:[#allocation2 + $0x28] sm:$0xff] %vm649_vm1, %v636_v57 }
 0x25c   :  { %v767_v58 = vpop.permute.xlu0 %766 }
 0x25d   :  { %789 = vst.msk [vmem:[#allocation2 + $0x10] sm:$0xff] %vm786_vm2, %v767_v58  ;;  %v769_v59 = vpop.permute.xlu1 %768 }
 0x25e   :  { %790 = vst.msk [vmem:[#allocation2 + $0x18] sm:$0xff] %vm786_vm2, %v769_v59 }
 0x260   :  { %v763_v60 = vpop.permute.xlu0 %762 }
 0x261   :  { %787 = vst.msk [vmem:[#allocation2] sm:$0xff] %vm786_vm2, %v763_v60  ;;  %v765_v61 = vpop.permute.xlu1 %764 }
 0x262   :  { %788 = vst.msk [vmem:[#allocation2 + $0x8] sm:$0xff] %vm786_vm2, %v765_v61 }
 0x264   :  { %v771_v62 = vpop.permute.xlu0 %770 }
 0x265   :  { %791 = vst.msk [vmem:[#allocation2 + $0x20] sm:$0xff] %vm786_vm2, %v771_v62 }
 0x266   :  { %v773_v63 = vpop.permute.xlu1 %772 }
 0x267   :  { %792 = vst.msk [vmem:[#allocation2 + $0x28] sm:$0xff] %vm786_vm2, %v773_v63 }
 0x268   :  { %v775_v0 = vpop.permute.xlu0 %774 }
 0x269   :  { %793 = vst.msk [vmem:[#allocation2 + $0x30] sm:$0xff] %vm786_vm2, %v775_v0 }
 0x26a   :  { %v777_v1 = vpop.permute.xlu1 %776 }
 0x26b   :  { %794 = vst.msk [vmem:[#allocation2 + $0x38] sm:$0xff] %vm786_vm2, %v777_v1 }
 0x26c   :  { %1059 = shalt.err (!%p1056_p4)
}
 0x26d   :  { %s1060_s21 = scalar_lea.hbm %s1338_s10, 1024 }
 0x26e   :  { %p1061_p5 = scmp.ne.s32.totalorder %s1338_s10, %s1060_s21  ;;  %p1064_p6 = scmp.lt.u32.totalorder %s1060_s21, %s1338_s10 }
 0x270   :  { %p1066_p7 = pnand %p1064_p6, %p1061_p5 }
 0x272   :  { %1069 = shalt.err (!%p1066_p7)
}
 0x273   :  { %s1076_s26 = smov 128   ;;  %s1077_s27 = smov 8  }
 0x274   :  { %806 = dma.vmem_to_hbm [thread:$0]  %s801_s18, 1024, %s1338_s10, [#allocation3], %s1076_s26, %s1076_s26, %s1077_s27  }
 0x275   :  { %1070 = dma.done.wait [#allocation3], 1024  }
 0x276   :  { %1071 = vsyncadd [#allocation3], 4294966272 }
 0x277   :  { %810 = vsyncpa [#allocation3], 1 }

</bundles_post_ra>
